<compile_context>
chip_gen: v6e
topology: v6e:2x2x1
jax: 0.10.0
libtpu: 0.0.40
codegen_flags: <defaults>
</compile_context>

<pallas_src>
import functools

import jax
import jax.numpy as jnp
from jax.experimental import pallas as pl
from jax.experimental.pallas import tpu as pltpu

WIDTH = 128                           # hidden width fixed by the module
SUBLANE = 16                          # bf16 sublane packing (also fine for f32)
MAX_BLOCK_B = 2048                    # batch-tile cap (rows)
TILE_VMEM_BUDGET = 32 * 1024 * 1024   # budget used when sizing the batch tile
VMEM_LIMIT = 48 * 1024 * 1024         # scoped VMEM limit (safe on v5e/v6e/v7x)


def _round_up(x, m):
    return (x + m - 1) // m * m


def ae_kernel(x_ref,
              w1_ref, b1_ref,
              w2_ref, b2_ref,
              w3_ref, b3_ref,
              w4_ref, b4_ref,
              o_ref):
    """Fused 4-layer MLP autoencoder forward (low-precision MXU, f32 accum)."""
    cdt = w1_ref.dtype                       # compute dtype (bf16 by default)
    x = x_ref[...].astype(cdt)               # in-kernel cast: no extra HBM pass

    # enc_hidden: (B, D) @ (D, 128) + (1, 128), ReLU
    h = jnp.dot(x, w1_ref[...], preferred_element_type=jnp.float32) + b1_ref[...]
    h = jnp.maximum(h, 0.0).astype(cdt)

    # enc_output: (B, 128) @ (128, 128) + (1, 128), ReLU
    c = jnp.dot(h, w2_ref[...], preferred_element_type=jnp.float32) + b2_ref[...]
    c = jnp.maximum(c, 0.0).astype(cdt)

    # dec_hidden: (B, 128) @ (128, 128) + (1, 128), ReLU
    d = jnp.dot(c, w3_ref[...], preferred_element_type=jnp.float32) + b3_ref[...]
    d = jnp.maximum(d, 0.0).astype(cdt)

    # dec_output: (B, 128) @ (128, D) + (1, D), ReLU (as in the spec)
    r = jnp.dot(d, w4_ref[...], preferred_element_type=jnp.float32) + b4_ref[...]
    r = jnp.maximum(r, 0.0)

    o_ref[...] = r.astype(o_ref.dtype)


@functools.partial(jax.jit,
                   static_argnames=("block_b", "compute_dtype", "out_dtype"))
def _ae_forward_impl(x, params, *, block_b, compute_dtype, out_dtype):
    B, D_in = x.shape
    cdt = compute_dtype
    f32 = jnp.float32

    # Weights to compute dtype (tiny, grid-invariant arrays); biases stay f32.
    w1 = params["w1"].astype(cdt)            # (D_in, 128)
    w2 = params["w2"].astype(cdt)            # (128, 128)
    w3 = params["w3"].astype(cdt)            # (128, 128)
    w4 = params["w4"].astype(cdt)            # (128, D_in)
    b1 = params["b1"].astype(f32)            # (1, 128)
    b2 = params["b2"].astype(f32)
    b3 = params["b3"].astype(f32)
    b4 = params["b4"].astype(f32)            # (1, D_in)

    grid = (pl.cdiv(B, block_b),)            # ragged batch tile; Pallas masks
    const_spec = lambda a: pl.BlockSpec(a.shape, lambda i: (0, 0))

    # Advisory cost estimate: 4 matmuls per row (x2 for multiply-add).
    flops = 4 * int(B) * WIDTH * (int(D_in) + WIDTH)
    bytes_accessed = (
        int(x.size) * x.dtype.itemsize
        + sum(int(a.size) * a.dtype.itemsize
              for a in (w1, b1, w2, b2, w3, b3, w4, b4))
        + int(B) * int(D_in) * jnp.dtype(out_dtype).itemsize)
    cost = pl.CostEstimate(flops=flops, transcendentals=0,
                           bytes_accessed=bytes_accessed)

    return pl.pallas_call(
        ae_kernel,
        out_shape=jax.ShapeDtypeStruct((B, D_in), out_dtype),
        grid_spec=pltpu.PrefetchScalarGridSpec(
            num_scalar_prefetch=0,
            grid=grid,
            in_specs=[
                pl.BlockSpec((block_b, D_in), lambda i: (i, 0)),   # x tile
                const_spec(w1), const_spec(b1),
                const_spec(w2), const_spec(b2),
                const_spec(w3), const_spec(b3),
                const_spec(w4), const_spec(b4),
            ],
            out_specs=pl.BlockSpec((block_b, D_in), lambda i: (i, 0)),
        ),
        compiler_params=pltpu.CompilerParams(
            dimension_semantics=("parallel",),   # batch steps shard across TCs
            vmem_limit_bytes=VMEM_LIMIT,
        ),
        cost_estimate=cost,
    )(x, w1, b1, w2, b2, w3, b3, w4, b4)


def _vmem_row_cap(D_in, x_itemsize, out_itemsize, cdt_itemsize):
    """Max batch-tile rows keeping tiles + weights under TILE_VMEM_BUDGET."""
    weight_bytes = 2 * ((2 * D_in * WIDTH + 2 * WIDTH * WIDTH) * cdt_itemsize
                        + (3 * WIDTH + D_in) * 4)           # double-buffered
    per_row = (2 * D_in * x_itemsize            # x tile, double-buffered
               + 2 * D_in * out_itemsize        # out tile, double-buffered
               + 4 * WIDTH * 4                  # f32 layer accumulators (h,c,d,r)
               + 3 * WIDTH * cdt_itemsize)      # cast activations
    cap = (TILE_VMEM_BUDGET - weight_bytes) // per_row
    return max(SUBLANE, int(cap) // SUBLANE * SUBLANE)


def ae_forward(x, params, *, block_b=None, compute_dtype=jnp.bfloat16,
               out_dtype=None):
    """AE forward pass.  x: (B, D_in).  params: pre-transposed weights/biases.

    block_b:       batch-tile rows (rounded to 16).  Default is VMEM-budget
                   sized (cap 2048 rows) and kept small enough that the grid
                   has >= 2 steps when possible (v7x megacore).
    compute_dtype: matmul input dtype (bf16 default; f32 accumulation always).
    out_dtype:     output dtype (default x.dtype; pass bf16 to halve out traffic).
    """
    B, D_in = x.shape
    if out_dtype is None:
        out_dtype = x.dtype
    cap = _vmem_row_cap(D_in, x.dtype.itemsize,
                        jnp.dtype(out_dtype).itemsize,
                        jnp.dtype(compute_dtype).itemsize)
    if block_b is None:
        # >= 2 grid steps when possible, then as big as the VMEM budget allows.
        block_b = min(MAX_BLOCK_B, cap, _round_up(pl.cdiv(B, 2), SUBLANE))
    block_b = int(min(max(SUBLANE, _round_up(int(block_b), SUBLANE)), cap))
    return _ae_forward_impl(x, params, block_b=block_b,
                            compute_dtype=compute_dtype, out_dtype=out_dtype)


def init_params(key, input_size, width=WIDTH, dtype=jnp.float32):
    """Mimics torch.nn.Linear init U(-1/sqrt(fan_in), 1/sqrt(fan_in)).

    Weights are stored already transposed to (in_features, out_features).
    """
    def linear(k, fan_in, fan_out):
        kw, kb = jax.random.split(k)
        bound = 1.0 / jnp.sqrt(jnp.float32(fan_in))
        w = jax.random.uniform(kw, (fan_in, fan_out), dtype, -bound, bound)
        b = jax.random.uniform(kb, (1, fan_out), dtype, -bound, bound)
        return w, b

    k1, k2, k3, k4 = jax.random.split(key, 4)
    w1, b1 = linear(k1, input_size, width)   # enc_hidden
    w2, b2 = linear(k2, width, width)        # enc_output
    w3, b3 = linear(k3, width, width)        # dec_hidden
    w4, b4 = linear(k4, width, input_size)   # dec_output
    return {"w1": w1, "b1": b1, "w2": w2, "b2": b2,
            "w3": w3, "b3": b3, "w4": w4, "b4": b4}


def ae_forward_ref(x, p):
    """Pure-JAX float32 reference (matches the PyTorch module)."""
    def layer(a, w, b):
        return jax.nn.relu(
            jnp.dot(a, w, preferred_element_type=jnp.float32) + b)
    h = layer(x, p["w1"], p["b1"])
    c = layer(h, p["w2"], p["b2"])
    d = layer(c, p["w3"], p["b3"])
    return layer(d, p["w4"], p["b4"])


if __name__ == "__main__":
    key = jax.random.PRNGKey(0)
    k_params, k_x = jax.random.split(key)

    batch = 50        # not a multiple of the tile -> exercises ragged batch tiling
    input_size = 64   # model_config.input_shape (< 128 lanes, full-dim block)

    params = init_params(k_params, input_size)
    x = jax.random.normal(k_x, (batch, input_size), dtype=jnp.float32)

    ref32 = ae_forward_ref(x, params)   # float32 reference

    # Default path: bf16 MXU compute, f32 accumulation, auto tile (grid >= 2 steps).
    out = jax.block_until_ready(ae_forward(x, params))
    assert out.shape == (batch, input_size) and out.dtype == x.dtype
    assert bool(jnp.all(out >= 0.0)), "final ReLU violated"
    # bf16 activations -> O(1e-2) relative error vs the f32 reference (documented).
    assert jnp.allclose(out, ref32, atol=5e-2, rtol=5e-2), "bf16 path mismatch"

    # f32 compute path, explicit small tile -> multi-step ragged grid.
    out32 = jax.block_until_ready(
        ae_forward(x, params, block_b=16, compute_dtype=jnp.float32))
    assert jnp.allclose(out32, ref32, atol=2e-2, rtol=2e-2), "f32 path mismatch"

    # Optional reduced-precision output path.
    outbf = jax.block_until_ready(ae_forward(x, params, out_dtype=jnp.bfloat16))
    assert outbf.dtype == jnp.bfloat16 and outbf.shape == (batch, input_size)

    print("KERNEL_OK")
</pallas_src>

<mosaic_0001>
module attributes {stable_mosaic.version = 11 : i64} {
  func.func @ae_kernel(%arg0: i32, %arg1: memref<32x64xf32, #tpu.memory_space<vmem>>, %arg2: memref<64x128xbf16, #tpu.memory_space<vmem>>, %arg3: memref<1x128xf32, #tpu.memory_space<vmem>>, %arg4: memref<128x128xbf16, #tpu.memory_space<vmem>>, %arg5: memref<1x128xf32, #tpu.memory_space<vmem>>, %arg6: memref<128x128xbf16, #tpu.memory_space<vmem>>, %arg7: memref<1x128xf32, #tpu.memory_space<vmem>>, %arg8: memref<128x64xbf16, #tpu.memory_space<vmem>>, %arg9: memref<1x64xf32, #tpu.memory_space<vmem>>, %arg10: memref<32x64xf32, #tpu.memory_space<vmem>>) attributes {dimension_semantics = [#tpu.dimension_semantics<parallel>], iteration_bounds = array<i64: 2>, scalar_prefetch = 0 : i64, scratch_operands = 0 : i64, tpu.core_type = #tpu.core_type<tc>, window_params = [{transform_indices = @transform_0, window_bounds = array<i64: 32, 64>}, {pipeline_mode = #tpu.pipeline_mode<synchronous>, transform_indices = @transform_1, window_bounds = array<i64: 64, 128>}, {pipeline_mode = #tpu.pipeline_mode<synchronous>, transform_indices = @transform_2, window_bounds = array<i64: 1, 128>}, {pipeline_mode = #tpu.pipeline_mode<synchronous>, transform_indices = @transform_3, window_bounds = array<i64: 128, 128>}, {pipeline_mode = #tpu.pipeline_mode<synchronous>, transform_indices = @transform_4, window_bounds = array<i64: 1, 128>}, {pipeline_mode = #tpu.pipeline_mode<synchronous>, transform_indices = @transform_5, window_bounds = array<i64: 128, 128>}, {pipeline_mode = #tpu.pipeline_mode<synchronous>, transform_indices = @transform_6, window_bounds = array<i64: 1, 128>}, {pipeline_mode = #tpu.pipeline_mode<synchronous>, transform_indices = @transform_7, window_bounds = array<i64: 128, 64>}, {pipeline_mode = #tpu.pipeline_mode<synchronous>, transform_indices = @transform_8, window_bounds = array<i64: 1, 64>}, {transform_indices = @transform_9, window_bounds = array<i64: 32, 64>}]} {
    %c0 = arith.constant 0 : index
    %c0_0 = arith.constant 0 : index
    %0 = vector.load %arg1[%c0, %c0_0] : memref<32x64xf32, #tpu.memory_space<vmem>>, vector<32x64xf32>
    %1 = arith.truncf %0 : vector<32x64xf32> to vector<32x64xbf16>
    %c0_1 = arith.constant 0 : index
    %c0_2 = arith.constant 0 : index
    %2 = vector.load %arg2[%c0_1, %c0_2] : memref<64x128xbf16, #tpu.memory_space<vmem>>, vector<64x128xbf16>
    %cst = arith.constant dense<0.000000e+00> : vector<32x128xf32>
    %3 = tpu.matmul %1, %2, %cst {dimension_numbers = #tpu.dot_dimension_numbers<[1], [0], [0], [1], [0, 0, 1, 1], [], []>} : vector<32x64xbf16>, vector<64x128xbf16>, vector<32x128xf32> -> vector<32x128xf32>
    %c0_3 = arith.constant 0 : index
    %c0_4 = arith.constant 0 : index
    %4 = vector.load %arg3[%c0_3, %c0_4] : memref<1x128xf32, #tpu.memory_space<vmem>>, vector<1x128xf32>
    %5 = vector.broadcast %4 : vector<1x128xf32> to vector<32x128xf32>
    %6 = arith.addf %3, %5 : vector<32x128xf32>
    %cst_5 = arith.constant 0.000000e+00 : f32
    %7 = vector.broadcast %cst_5 : f32 to vector<32x128xf32>
    %8 = arith.maximumf %6, %7 : vector<32x128xf32>
    %9 = arith.truncf %8 : vector<32x128xf32> to vector<32x128xbf16>
    %c0_6 = arith.constant 0 : index
    %c0_7 = arith.constant 0 : index
    %10 = vector.load %arg4[%c0_6, %c0_7] : memref<128x128xbf16, #tpu.memory_space<vmem>>, vector<128x128xbf16>
    %cst_8 = arith.constant dense<0.000000e+00> : vector<32x128xf32>
    %11 = tpu.matmul %9, %10, %cst_8 {dimension_numbers = #tpu.dot_dimension_numbers<[1], [0], [0], [1], [0, 0, 1, 1], [], []>} : vector<32x128xbf16>, vector<128x128xbf16>, vector<32x128xf32> -> vector<32x128xf32>
    %c0_9 = arith.constant 0 : index
    %c0_10 = arith.constant 0 : index
    %12 = vector.load %arg5[%c0_9, %c0_10] : memref<1x128xf32, #tpu.memory_space<vmem>>, vector<1x128xf32>
    %13 = vector.broadcast %12 : vector<1x128xf32> to vector<32x128xf32>
    %14 = arith.addf %11, %13 : vector<32x128xf32>
    %cst_11 = arith.constant 0.000000e+00 : f32
    %15 = vector.broadcast %cst_11 : f32 to vector<32x128xf32>
    %16 = arith.maximumf %14, %15 : vector<32x128xf32>
    %17 = arith.truncf %16 : vector<32x128xf32> to vector<32x128xbf16>
    %c0_12 = arith.constant 0 : index
    %c0_13 = arith.constant 0 : index
    %18 = vector.load %arg6[%c0_12, %c0_13] : memref<128x128xbf16, #tpu.memory_space<vmem>>, vector<128x128xbf16>
    %cst_14 = arith.constant dense<0.000000e+00> : vector<32x128xf32>
    %19 = tpu.matmul %17, %18, %cst_14 {dimension_numbers = #tpu.dot_dimension_numbers<[1], [0], [0], [1], [0, 0, 1, 1], [], []>} : vector<32x128xbf16>, vector<128x128xbf16>, vector<32x128xf32> -> vector<32x128xf32>
    %c0_15 = arith.constant 0 : index
    %c0_16 = arith.constant 0 : index
    %20 = vector.load %arg7[%c0_15, %c0_16] : memref<1x128xf32, #tpu.memory_space<vmem>>, vector<1x128xf32>
    %21 = vector.broadcast %20 : vector<1x128xf32> to vector<32x128xf32>
    %22 = arith.addf %19, %21 : vector<32x128xf32>
    %cst_17 = arith.constant 0.000000e+00 : f32
    %23 = vector.broadcast %cst_17 : f32 to vector<32x128xf32>
    %24 = arith.maximumf %22, %23 : vector<32x128xf32>
    %25 = arith.truncf %24 : vector<32x128xf32> to vector<32x128xbf16>
    %c0_18 = arith.constant 0 : index
    %c0_19 = arith.constant 0 : index
    %26 = vector.load %arg8[%c0_18, %c0_19] : memref<128x64xbf16, #tpu.memory_space<vmem>>, vector<128x64xbf16>
    %cst_20 = arith.constant dense<0.000000e+00> : vector<32x64xf32>
    %27 = tpu.matmul %25, %26, %cst_20 {dimension_numbers = #tpu.dot_dimension_numbers<[1], [0], [0], [1], [0, 0, 1, 1], [], []>} : vector<32x128xbf16>, vector<128x64xbf16>, vector<32x64xf32> -> vector<32x64xf32>
    %c0_21 = arith.constant 0 : index
    %c0_22 = arith.constant 0 : index
    %28 = vector.load %arg9[%c0_21, %c0_22] : memref<1x64xf32, #tpu.memory_space<vmem>>, vector<1x64xf32>
    %29 = vector.broadcast %28 : vector<1x64xf32> to vector<32x64xf32>
    %30 = arith.addf %27, %29 : vector<32x64xf32>
    %cst_23 = arith.constant 0.000000e+00 : f32
    %31 = vector.broadcast %cst_23 : f32 to vector<32x64xf32>
    %32 = arith.maximumf %30, %31 : vector<32x64xf32>
    %c0_24 = arith.constant 0 : index
    %c0_25 = arith.constant 0 : index
    %33 = vector.load %arg10[%c0_24, %c0_25] : memref<32x64xf32, #tpu.memory_space<vmem>>, vector<32x64xf32>
    tpu.vector_store %arg10[%c0_24, %c0_25], %32 {strides = array<i32>} : memref<32x64xf32, #tpu.memory_space<vmem>>, vector<32x64xf32>,
    return
  }
  func.func @transform_0(%arg0: i32) -> (i32, i32) {
    %c0_i32 = arith.constant 0 : i32
    %c0_i32_0 = arith.constant 0 : i32
    return %arg0, %c0_i32 : i32, i32
  }
  func.func @transform_1(%arg0: i32) -> (i32, i32) {
    %c0_i32 = arith.constant 0 : i32
    %c0_i32_0 = arith.constant 0 : i32
    %c0_i32_1 = arith.constant 0 : i32
    return %c0_i32, %c0_i32_0 : i32, i32
  }
  func.func @transform_2(%arg0: i32) -> (i32, i32) {
    %c0_i32 = arith.constant 0 : i32
    %c0_i32_0 = arith.constant 0 : i32
    %c0_i32_1 = arith.constant 0 : i32
    return %c0_i32, %c0_i32_0 : i32, i32
  }
  func.func @transform_3(%arg0: i32) -> (i32, i32) {
    %c0_i32 = arith.constant 0 : i32
    %c0_i32_0 = arith.constant 0 : i32
    %c0_i32_1 = arith.constant 0 : i32
    return %c0_i32, %c0_i32_0 : i32, i32
  }
  func.func @transform_4(%arg0: i32) -> (i32, i32) {
    %c0_i32 = arith.constant 0 : i32
    %c0_i32_0 = arith.constant 0 : i32
    %c0_i32_1 = arith.constant 0 : i32
    return %c0_i32, %c0_i32_0 : i32, i32
  }
  func.func @transform_5(%arg0: i32) -> (i32, i32) {
    %c0_i32 = arith.constant 0 : i32
    %c0_i32_0 = arith.constant 0 : i32
    %c0_i32_1 = arith.constant 0 : i32
    return %c0_i32, %c0_i32_0 : i32, i32
  }
  func.func @transform_6(%arg0: i32) -> (i32, i32) {
    %c0_i32 = arith.constant 0 : i32
    %c0_i32_0 = arith.constant 0 : i32
    %c0_i32_1 = arith.constant 0 : i32
    return %c0_i32, %c0_i32_0 : i32, i32
  }
  func.func @transform_7(%arg0: i32) -> (i32, i32) {
    %c0_i32 = arith.constant 0 : i32
    %c0_i32_0 = arith.constant 0 : i32
    %c0_i32_1 = arith.constant 0 : i32
    return %c0_i32, %c0_i32_0 : i32, i32
  }
  func.func @transform_8(%arg0: i32) -> (i32, i32) {
    %c0_i32 = arith.constant 0 : i32
    %c0_i32_0 = arith.constant 0 : i32
    %c0_i32_1 = arith.constant 0 : i32
    return %c0_i32, %c0_i32_0 : i32, i32
  }
  func.func @transform_9(%arg0: i32) -> (i32, i32) {
    %c0_i32 = arith.constant 0 : i32
    %c0_i32_0 = arith.constant 0 : i32
    return %arg0, %c0_i32 : i32, i32
  }
}

</mosaic_0001>

<bundles_post_ra>
// kernel: _ae_forward_impl.1
= control target key start
LH: loop header
LB: loop body
LE: loop exit
PB: predicated region body
PF: predicated region fallthrough
CT: control target
= control target key end

     0   :  { %14 = vsyncpa [#allocation3], 0  ;;  %s1488_s0 = inlined_call_operand.vmem [shape: f32[50,64], index: 0, kind: input, shape index: {}]   ;;  %s1489_s1 = inlined_call_operand.vmem [shape: bf16[64,128], index: 1, kind: input, shape index: {}]   ;;  %s1490_s2 = inlined_call_operand.vmem [shape: f32[1,128], index: 2, kind: input, shape index: {}]   ;;  %s1491_s3 = inlined_call_operand.vmem [shape: bf16[128,128], index: 3, kind: input, shape index: {}]   ;;  %s1492_s4 = inlined_call_operand.vmem [shape: f32[1,128], index: 4, kind: input, shape index: {}]   ;;  %s1493_s5 = inlined_call_operand.vmem [shape: bf16[128,128], index: 5, kind: input, shape index: {}]   ;;  %s1494_s6 = inlined_call_operand.vmem [shape: f32[1,128], index: 6, kind: input, shape index: {}]   ;;  %s1495_s7 = inlined_call_operand.vmem [shape: bf16[128,64], index: 7, kind: input, shape index: {}]   ;;  %s1496_s8 = inlined_call_operand.vmem [shape: f32[1,64], index: 8, kind: input, shape index: {}]   ;;  %s1497_s9 = inlined_call_operand.hbm [shape: f32[50,64], index: 9, kind: output, shape index: {}]  }
   0x1   :  { %16 = vsyncpa [#allocation3 + $0x1], 0  ;;  %s1270_s30 = smov 0   ;;  %s1272_s10 = smov 0  }
   0x2   :  { %s1274_s11 = smov 0   ;;  %s1276_s12 = smov 0  }
   0x3 LB: > { %s1291_s13 = sadd.s32 4294967295, %s1215_s12   ;;  %s928_s14 = sadd.s32 4294967294, %s1215_s12   ;;  %s1215_s12 = sphi %s1276_s12, %s1505_s12   ;;  %s1211_s11 = sphi %s1274_s11, %s1504_s11   ;;  %s1207_s10 = sphi %s1272_s10, %s1503_s10   ;;  %s1203_s30 = sphi %s1270_s30, %s1502_s30  }
   0x4   : > { %s1295_s15 = sadd.s32 1, %s1215_s12   ;;  %s223_s16 = sadd.s32 1, %s1211_s11 }
   0x5   : > { %s220_s17 = ssub.s32 %s1215_s12, %s1295_s15  ;;  %p233_p0 = scmp.ne.s32.totalorder %s1211_s11, %s1207_s10 }
   0x6   : > { %p221_p1 = scmp.eq.s32.totalorder %s220_s17, 0  ;;  %p234_p2 = scmp.eq.s32.totalorder %s1291_s13, 1 }
   0x7   : > { %p239_p3 = scmp.ne.s32.totalorder %s1207_s10, %s1203_s30  ;;  %p240_p4 = scmp.eq.s32.totalorder %s928_s14, 1 }
   0x8   : > { %s1306_s18 = scalar_select %p221_p1, %s1211_s11, %s223_s16  }
   0x9   : > { %p1308_p5 = por %p234_p2, %p233_p0  ;;  %p1312_p6 = por %p240_p4, %p239_p3 }
   0xa   : > { %1498 = sst [smem:[#allocation5_spill]] %s1306_s18  ;;  %p931_p7 = scmp.ge.s32.totalorder %s1215_s12, 1 }
   0xb   : > { %p299_p8 = scmp.lt.s32.totalorder %s1215_s12, 3 }
   0xd   : > { %p300_p9 = pnand %p931_p7, %p299_p8 }
   0xe   : > { %s1322_s23 = sshll.u32 (!%p300_p9), %s1291_s13, 2  ;;  %s336_s29 = sand.u32 (!%p300_p9), 1, %s1207_s10  }
   0xf   : > { %303 = sbr.rel (%p300_p9) target bundleno = 886 (0x376), region = 56  ;;  %p344_p10 = scmp.lt.s32.totalorder (!%p300_p9), %s1322_s23, 6 }
  0x10   : > { %s1429_s21 = scalar_lea.sflag (!%p300_p9), [#allocation3], %s336_s29 }
  0x14   : > { %v1127_v0 = vld [vmem:[%s1489_s1 + $0x18] sm:$0xff]   ;;  %v1128_v1 = vld [vmem:[%s1489_s1 + $0x10] sm:$0xff]   ;;  %v1129_v2 = vld [vmem:[%s1489_s1 + $0x8] sm:$0xff]   ;;  %s345_s28 = scalar_select %p344_p10, %s1322_s23, 6  ;;  %vm404_vm0 = vcmask 523264  }
  0x15   : > { %1015 = vmatprep.subr.bf16.mxu0 %v1127_v0  ;;  %v1131_v3 = vld [vmem:[%s1491_s3 + $0x38] sm:$0xff]   ;;  %v1132_v4 = vld [vmem:[%s1491_s3 + $0x30] sm:$0xff]   ;;  %v1130_v5 = vld [vmem:[%s1489_s1] sm:$0xff]   ;;  %s855_s22 = ssub.s32 (%p1308_p5), 7, %s1322_s23 }
  0x16   : > { %1016 = vmatpush3.bf16.msra.mxu0 %v1127_v0  ;;  %s934_s16 = sshll.u32 %s345_s28, 3  ;;  %1027 = vmatprep.subr.bf16.mxu1 %v1131_v3  ;;  %v1133_v9 = vld [vmem:[%s1491_s3 + $0x28] sm:$0xff]   ;;  %v1134_v12 = vld [vmem:[%s1491_s3 + $0x20] sm:$0xff]   ;;  %v1135_v14 = vld [vmem:[%s1491_s3 + $0x18] sm:$0xff]   ;;  %p856_p11 = scmp.lt.s32.totalorder (%p1308_p5), %s855_s22, 4 }
  0x17   : > { %1017 = vmatprep.subr.bf16.mxu0 %v1128_v1  ;;  %s347_s25 = scalar_lea.vmem %s1488_s0, %s934_s16  ;;  %1028 = vmatpush3.bf16.msra.mxu1 %v1131_v3  ;;  %v1136_v15 = vld [vmem:[%s1491_s3 + $0x10] sm:$0xff]   ;;  %v1137_v16 = vld [vmem:[%s1491_s3 + $0x8] sm:$0xff]   ;;  %v1138_v17 = vld [vmem:[%s1491_s3] sm:$0xff]   ;;  %s932_s16 = sshll.u32 %s336_s29, 5 }
  0x18   : > { %v359_v6 = vld [vmem:[%s347_s25] sm:$0xff]  ;;  %v360_v7 = vld [vmem:[%s347_s25 + $0x8] sm:$0xff]  ;;  %1029 = vmatprep.subr.bf16.mxu1 %v1132_v4  ;;  %v361_v10 = vld [vmem:[%s347_s25 + $0x10] sm:$0xff]  ;;  %s338_s17 = scalar_lea.vmem [#allocation2], %s932_s16 }
  0x19   : > { %v363_v8 = vpack.c.bf16 %v360_v7, %v359_v6  ;;  %v362_v11 = vld [vmem:[%s347_s25 + $0x18] sm:$0xff]  ;;  %v1140_v19 = vld [vmem:[%s1493_s5 + $0x30] sm:$0xff]   ;;  %v1141_v20 = vld [vmem:[%s1493_s5 + $0x28] sm:$0xff]  }
  0x1a   : > { %1018 = vmatpush3.bf16.msra.mxu0 %v1128_v1  ;;  %v364_v13 = vpack.c.bf16 %v362_v11, %v361_v10  ;;  %v1139_v18 = vld [vmem:[%s1493_s5 + $0x38] sm:$0xff]   ;;  %v1142_v21 = vld [vmem:[%s1493_s5 + $0x20] sm:$0xff]   ;;  %v1144_v38 = vld [vmem:[%s1493_s5 + $0x10] sm:$0xff]  }
  0x1b   : > { %1019 = vmatprep.subr.bf16.mxu0 %v1129_v2  ;;  %1023 = vmatprep.mubr.msk.bf16.mxu0 %vm404_vm0, %v363_v8  ;;  %v1143_v22 = vld [vmem:[%s1493_s5 + $0x18] sm:$0xff]   ;;  %v935_v25 = vld [vmem:[%s1490_s2] ss:$0 sm:$0xff]  ;;  %v1145_v39 = vld [vmem:[%s1493_s5 + $0x8] sm:$0xff]  }
  0x1c   : > { %1030 = vmatpush3.bf16.msra.mxu1 %v1132_v4  ;;  %v1146_v40 = vld [vmem:[%s1493_s5] sm:$0xff]   ;;  %v1147_v41 = vld [vmem:[%s1495_s7 + $0x38] sm:$0xff]   ;;  %v1148_v42 = vld [vmem:[%s1495_s7 + $0x30] sm:$0xff]  }
  0x1d   : > { %1031 = vmatprep.subr.bf16.mxu1 %v1133_v9  ;;  %v1149_v43 = vld [vmem:[%s1495_s7 + $0x28] sm:$0xff]   ;;  %v1150_v44 = vld [vmem:[%s1495_s7 + $0x20] sm:$0xff]   ;;  %v1151_v45 = vld [vmem:[%s1495_s7 + $0x18] sm:$0xff]  }
  0x1e   : > { %1020 = vmatpush3.bf16.msra.mxu0 %v1129_v2  ;;  %v942_v48 = vld [vmem:[%s1492_s4] ss:$0 sm:$0xff]  ;;  %v1152_v61 = vld [vmem:[%s1495_s7 + $0x10] sm:$0xff]   ;;  %v1153_v62 = vld [vmem:[%s1495_s7 + $0x8] sm:$0xff]  }
  0x1f   : > { %1021 = vmatprep.subr.bf16.mxu0 %v1130_v5  ;;  %v1154_v63 = vld [vmem:[%s1495_s7] sm:$0xff]  }
  0x20   : > { %1032 = vmatpush3.bf16.msra.mxu1 %v1133_v9  ;;  %v951_v2 = vld [vmem:[%s1494_s6] ss:$0 sm:$0xff] }
  0x21   : > { %1033 = vmatprep.subr.bf16.mxu1 %v1134_v12 }
  0x22   : > { %1022 = vmatpush3.bf16.msra.mxu0 %v1130_v5 }
  0x23   : > { %1047 = vmatprep.subr.bf16.mxu0 %v1139_v18 }
  0x24   : > { %1034 = vmatpush3.bf16.msra.mxu1 %v1134_v12 }
  0x25   : > { %1024 = vmatmul.mubr.msk.bf16.vlgmr.msra.gmra.mxu0 %vm404_vm0, %v364_v13  ;;  %1035 = vmatprep.subr.bf16.mxu1 %v1135_v14 }
  0x26   : > { %1048 = vmatpush3.bf16.msra.mxu0 %v1139_v18 }
  0x27   : > { %1049 = vmatprep.subr.bf16.mxu0 %v1140_v19 }
  0x28   : > { %1036 = vmatpush3.bf16.msra.mxu1 %v1135_v14 }
  0x29   : > { %1037 = vmatprep.subr.bf16.mxu1 %v1136_v15 }
  0x2a   : > { %1050 = vmatpush3.bf16.msra.mxu0 %v1140_v19 }
  0x2b   : > { %1051 = vmatprep.subr.bf16.mxu0 %v1141_v20 }
  0x2c   : > { %1038 = vmatpush3.bf16.msra.mxu1 %v1136_v15  ;;  %v960_v15 = vld [vmem:[%s1496_s8] ss:$0 sm:$0xff] }
  0x2d   : > { %1039 = vmatprep.subr.bf16.mxu1 %v1137_v16 }
  0x2e   : > { %1052 = vmatpush3.bf16.msra.mxu0 %v1141_v20 }
  0x2f   : > { %1053 = vmatprep.subr.bf16.mxu0 %v1142_v21 }
  0x30   : > { %1040 = vmatpush3.bf16.msra.mxu1 %v1137_v16 }
  0x31   : > { %1041 = vmatprep.subr.bf16.mxu1 %v1138_v17 }
  0x32   : > { %1054 = vmatpush3.bf16.msra.mxu0 %v1142_v21 }
  0x33   : > { %1055 = vmatprep.subr.bf16.mxu0 %v1143_v22 }
  0x34   : > { %1042 = vmatpush3.bf16.msra.mxu1 %v1138_v17 }
  0x35   : > { %1067 = vmatprep.subr.bf16.mxu1 %v1147_v41 }
  0x36   : > { %1056 = vmatpush3.bf16.msra.mxu0 %v1143_v22 }
  0x37   : > { %1057 = vmatprep.subr.bf16.mxu0 %v1144_v38 }
  0x3a   : > { %1058 = vmatpush3.bf16.msra.mxu0 %v1144_v38 }
  0x3b   : > { %1059 = vmatprep.subr.bf16.mxu0 %v1145_v39 }
  0x3e   : > { %1060 = vmatpush3.bf16.msra.mxu0 %v1145_v39 }
  0x3f   : > { %1061 = vmatprep.subr.bf16.mxu0 %v1146_v40 }
  0x42   : > { %1062 = vmatpush3.bf16.msra.mxu0 %v1146_v40 }
  0xe5   : > { %v1025_v23 = vpop.f32.mrf.mxu0 }
  0xe6   : > { %v454_v29 = vadd.f32 %v1025_v23, %v935_v25 }
  0xe7   : > { %v445_v24 = vpop.f32.mrf.mxu0 }
  0xe8   : > { %v446_v27 = vadd.f32 %v935_v25, %v445_v24  ;;  %v462_v35 = vmax.f32 %v454_v29, 0.0 }
  0xe9   : > { %v1026_v26 = vpop.f32.mrf.mxu0 }
  0xea   : > { %v457_v28 = vadd.f32 %v1026_v26, %v935_v25  ;;  %v460_v33 = vmax.f32 %v446_v27, 0.0 }
  0xeb   : > { %v448_v30 = vpop.f32.mrf.mxu0 }
  0xec   : > { %v449_v31 = vadd.f32 %v935_v25, %v448_v30  ;;  %v463_v32 = vmax.f32 %v457_v28, 0.0 }
  0xee   : > { %v461_v34 = vmax.f32 %v449_v31, 0.0  ;;  %v465_v37 = vpack.c.bf16 %v463_v32, %v462_v35 }
  0xf0   : > { %v464_v36 = vpack.c.bf16 %v461_v34, %v460_v33 }
  0xf2   : > { %1043 = vmatprep.mubr.bf16.mxu1 %v464_v36 }
  0xf3   : > { %1044 = vmatmul.mubr.bf16.vlgmr.msra.gmra.mxu1 %v465_v37 }
  0xf4   : > { %1068 = vmatpush3.bf16.msra.mxu1 %v1147_v41 }
  0xf5   : > { %1069 = vmatprep.subr.bf16.mxu1 %v1148_v42 }
  0xf8   : > { %1070 = vmatpush3.bf16.msra.mxu1 %v1148_v42 }
  0xf9   : > { %1071 = vmatprep.subr.bf16.mxu1 %v1149_v43 }
  0xfc   : > { %1072 = vmatpush3.bf16.msra.mxu1 %v1149_v43 }
  0xfd   : > { %1073 = vmatprep.subr.bf16.mxu1 %v1150_v44 }
 0x100   : > { %1074 = vmatpush3.bf16.msra.mxu1 %v1150_v44 }
 0x101   : > { %1075 = vmatprep.subr.bf16.mxu1 %v1151_v45 }
 0x104   : > { %1076 = vmatpush3.bf16.msra.mxu1 %v1151_v45 }
 0x105   : > { %1077 = vmatprep.subr.bf16.mxu1 %v1152_v61 }
 0x108   : > { %1078 = vmatpush3.bf16.msra.mxu1 %v1152_v61 }
 0x109   : > { %1079 = vmatprep.subr.bf16.mxu1 %v1153_v62 }
 0x10c   : > { %1080 = vmatpush3.bf16.msra.mxu1 %v1153_v62 }
 0x10d   : > { %1081 = vmatprep.subr.bf16.mxu1 %v1154_v63 }
 0x110   : > { %1082 = vmatpush3.bf16.msra.mxu1 %v1154_v63 }
 0x1b3   : > { %v1045_v46 = vpop.f32.mrf.mxu1 }
 0x1b4   : > { %v580_v52 = vadd.f32 %v1045_v46, %v942_v48 }
 0x1b5   : > { %v571_v47 = vpop.f32.mrf.mxu1 }
 0x1b6   : > { %v572_v50 = vadd.f32 %v942_v48, %v571_v47  ;;  %v588_v58 = vmax.f32 %v580_v52, 0.0 }
 0x1b7   : > { %v1046_v49 = vpop.f32.mrf.mxu1 }
 0x1b8   : > { %v583_v51 = vadd.f32 %v1046_v49, %v942_v48  ;;  %v586_v56 = vmax.f32 %v572_v50, 0.0 }
 0x1b9   : > { %v574_v53 = vpop.f32.mrf.mxu1 }
 0x1ba   : > { %v575_v54 = vadd.f32 %v942_v48, %v574_v53  ;;  %v589_v55 = vmax.f32 %v583_v51, 0.0 }
 0x1bc   : > { %v587_v57 = vmax.f32 %v575_v54, 0.0  ;;  %v591_v60 = vpack.c.bf16 %v589_v55, %v588_v58 }
 0x1be   : > { %v590_v59 = vpack.c.bf16 %v587_v57, %v586_v56 }
 0x1c0   : > { %1063 = vmatprep.mubr.bf16.mxu0 %v590_v59 }
 0x1c1   : > { %1064 = vmatmul.mubr.bf16.vlgmr.msra.gmra.mxu0 %v591_v60 }
 0x281   : > { %v1065_v0 = vpop.f32.mrf.mxu0 }
 0x282   : > { %v706_v6 = vadd.f32 %v1065_v0, %v951_v2 }
 0x283   : > { %v697_v1 = vpop.f32.mrf.mxu0 }
 0x284   : > { %v698_v4 = vadd.f32 %v951_v2, %v697_v1  ;;  %v714_v12 = vmax.f32 %v706_v6, 0.0 }
 0x285   : > { %v1066_v3 = vpop.f32.mrf.mxu0 }
 0x286   : > { %v709_v5 = vadd.f32 %v1066_v3, %v951_v2  ;;  %v712_v10 = vmax.f32 %v698_v4, 0.0 }
 0x287   : > { %v700_v7 = vpop.f32.mrf.mxu0 }
 0x288   : > { %v701_v8 = vadd.f32 %v951_v2, %v700_v7  ;;  %v715_v9 = vmax.f32 %v709_v5, 0.0 }
 0x28a   : > { %v713_v11 = vmax.f32 %v701_v8, 0.0  ;;  %v717_v14 = vpack.c.bf16 %v715_v9, %v714_v12 }
 0x28c   : > { %v716_v13 = vpack.c.bf16 %v713_v11, %v712_v10 }
 0x28e   : > { %1083 = vmatprep.mubr.bf16.mxu1 %v716_v13 }
 0x28f   : > { %1084 = vmatmul.mubr.bf16.vlgmr.msra.gmra.mxu1 %v717_v14 }
 0x34f   : > { %v1085_v16 = vpop.f32.mrf.mxu1 }
 0x350   : > { %v832_v17 = vadd.f32 %v1085_v16, %v960_v15 }
 0x351   : > { %v823_v18 = vpop.f32.mrf.mxu1 }
 0x352   : > { %v840_v19 = vmax.f32 %v832_v17, 0.0  ;;  %v824_v20 = vadd.f32 %v960_v15, %v823_v18 }
 0x353   : > { %v1086_v21 = vpop.f32.mrf.mxu1 }
 0x354   : > { %844 = vst.msk [vmem:[%s338_s17 + $0x10] sm:$0xff] %vm404_vm0, %v840_v19  ;;  %v838_v22 = vmax.f32 %v824_v20, 0.0  ;;  %v835_v23 = vadd.f32 %v1086_v21, %v960_v15 }
 0x355   : > { %v826_v24 = vpop.f32.mrf.mxu1 }
 0x356   : > { %842 = vst.msk [vmem:[%s338_s17] sm:$0xff] %vm404_vm0, %v838_v22  ;;  %v841_v25 = vmax.f32 %v835_v23, 0.0  ;;  %v827_v26 = vadd.f32 %v960_v15, %v826_v24  ;;  %853 = sbr.rel (!%p1308_p5) target bundleno = 886 (0x376), region = 60 }
 0x358   : > { %845 = vst.msk [vmem:[%s338_s17 + $0x18] sm:$0xff] %vm404_vm0, %v841_v25  ;;  %v839_v27 = vmax.f32 %v827_v26, 0.0 }
 0x35a   : > { %843 = vst.msk [vmem:[%s338_s17 + $0x8] sm:$0xff] %vm404_vm0, %v839_v27 }
 0x35b   : > { %s1507_s22 = smov (!%p856_p11, %s855_s22), 4 }
 0x35c   : > { %s1434_s24 = sshll.u32 %s1507_s22, 7 }
 0x35d   : > { %s860_s25 = ssub.s32 512, %s1434_s24 }
 0x35e   : > { %861 = vsyncadd %s1429_s21, %s860_s25  ;;  %p972_p12 = scmp.ne.s32.totalorder %s1434_s24, 0  ;;  %s978_s26 = sshll.u32 %s1291_s13, 9 }
 0x35f   : > { %s1443_s19 = scalar_lea.hbm %s1497_s9, %s978_s26  ;;  %s866_s29 = sshll.u32 %s338_s17, 4  ;;  %s1445_s29 = int_to_ptr.vmem [resolvable:$true] %s866_s29 }
 0x360   : > { %s1155_s23 = scalar_lea.vmem %s1445_s29, %s1434_s24  ;;  %s1217_s14 = smov [#allocation2]  }
 0x361   : > { %p1156_p13 = scmp.ne.s32.totalorder %s1445_s29, %s1155_s23  ;;  %s1159_s18 = sshll.u32 %s1217_s14, 4  ;;  %s1160_s18 = int_to_ptr.vmem [resolvable:$false] %s1159_s18 }
 0x362   : > { %s1161_s13 = scalar_lea.vmem %s1160_s18, 1024  ;;  %p1162_p2 = scmp.lt.s32.totalorder %s1445_s29, %s1160_s18 }
 0x363   : > { %p1157_p0 = pnand %p1156_p13, %p972_p12  ;;  %p1163_p3 = scmp.lt.s32.totalorder %s1161_s13, %s1155_s23 }
 0x365   : > { %p1158_p1 = pneg %p1157_p0  ;;  %p1164_p4 = por %p1163_p3, %p1162_p2 }
 0x367   : > { %p1165_p5 = pnand %p1164_p4, %p1158_p1 }
 0x369   : > { %1168 = shalt.err (!%p1165_p5)
}
 0x36a   : > { %s1169_s16 = scalar_lea.hbm %s1443_s19, %s1434_s24  ;;  %s1173_s25 = scalar_lea.hbm %s1497_s9, 896 }
 0x36b   : > { %p1170_p7 = scmp.ne.s32.totalorder %s1443_s19, %s1169_s16  ;;  %p1174_p10 = scmp.lt.s32.totalorder %s1443_s19, %s1497_s9 }
 0x36c   : > { %p1175_p11 = scmp.lt.s32.totalorder %s1173_s25, %s1169_s16 }
 0x36d   : > { %p1171_p8 = pnand %p1170_p7, %p972_p12 }
 0x36e   : > { %p1176_p13 = por %p1175_p11, %p1174_p10 }
 0x36f   : > { %p1172_p9 = pneg %p1171_p8 }
 0x371   : > { %p1177_p0 = pnand %p1176_p13, %p1172_p9 }
 0x373   : > { %1180 = shalt.err (!%p1177_p0)
}
 0x374   : > { %s1218_s28 = smov 128   ;;  %s1219_s23 = smov 8  }
 0x375   : > { %872 = dma.vmem_to_hbm [thread:$0]  (%p972_p12), %s1445_s29, %s1434_s24, %s1443_s19, %s1429_s21, %s1218_s28, %s1218_s28, %s1219_s23  }
 0x376 PF: > { %p1092_p1 = scmp.ge.s32.totalorder %s1215_s12, 2  ;;  %s881_s14 = sand.u32 1, %s1203_s30  }
 0x377   : > { %s882_s18 = scalar_lea.sflag [#allocation3], %s881_s14 }
 0x378   : > { %p1089_p2 = pnand %p1092_p1, %p1312_p6 }
 0x37a   : > { %p1090_p3 = pneg %p1089_p2 }
 0x37c   : > { %1198 = dma.done.wait (%p1090_p3), %s882_s18, 512  }
 0x37d   : > { %1200 = vsyncadd (%p1090_p3), %s882_s18, 4294966784  ;;  %s1501_s13 = sld [smem:[#allocation5_spill]]  ;;  %p19_p4 = scmp.ge.s32.totalorder %s1295_s15, 4  }
 0x37e   : > { %s1502_s30 = smov %s1207_s10  ;;  %s1503_s10 = smov %s1211_s11 }
 0x37f   : > { %s1505_s12 = smov %s1295_s15  ;;  %21 = sbr.rel (!%p19_p4) target bundleno = 3 (0x3), region = 91 }
 0x383   : > { %s1504_s11 = smov %s1501_s13 }
 0x384   :  { %887 = vsyncpa [#allocation3], 1 }
 0x385   :  { %889 = vsyncpa [#allocation3 + $0x1], 1 }

</bundles_post_ra>
